<compile_context>
chip_gen: v5e
topology: v5e:2x2
jax: 0.10.0
libtpu: 0.0.40
codegen_flags: <defaults>
</compile_context>

<pallas_src>
import functools

import jax
import jax.numpy as jnp
from jax import lax
from jax.experimental import pallas as pl
from jax.experimental.pallas import tpu as pltpu

_NEG_BIG = -1e30                      # finite "-inf" used to mask padded columns
_VMEM_BUDGET = 24 * 1024 * 1024       # per-step working-set budget (fits all gens)
_VMEM_LIMIT = 32 * 1024 * 1024        # scoped-VMEM limit handed to Mosaic


def _round_up(v, m):
    return (v + m - 1) // m * m


def _pick_tiling(B, D, elt_bytes):
    """Choose (TB, TN, B_pad, y_resident).

    TB: row tile of the [B, B] logits (block of x rows, resident across column
        steps).  Bigger TB -> fewer passes over y when y is not resident.
    TN: logits column chunk materialized per grid step (live [TB, TN] f32 slab);
        capped at 256 to bound vreg/spill pressure.
    y_resident: if the whole padded y^T (matmul dtype) fits the budget it is a
        single full-extent block with a constant index_map (one HBM read total).
    """
    if B <= 128:                           # one tile covers everything
        t = _round_up(max(B, 1), 8)
        return t, t, t, True

    TN = 256
    TB = 128
    for cand in (1024, 512, 256):
        if B <= cand:                      # keep >= 2 row tiles so the "parallel"
            continue                       # axis can split over v7x's 2 TensorCores
        if 2 * cand * D * elt_bytes + cand * TN * 4 <= _VMEM_BUDGET // 2:
            TB = cand
            break

    B_pad = _round_up(B, max(TB, TN))      # TB, TN are 128*2^k -> min divides max
    y_bytes = B_pad * D * elt_bytes
    ws_rest = 2 * TB * D * elt_bytes + TB * TN * 4
    y_resident = (2 * y_bytes + ws_rest) <= _VMEM_BUDGET
    return TB, TN, B_pad, y_resident


def _contrastive_kernel(x_ref, yt_ref, out_ref, m_sc, l_sc, d_sc, *,
                        tb, tn, n_valid, padded):
    """One (row-tile i, column-chunk j) step of the online-softmax CE loss.

    x_ref : [TB, D]                normalized x rows * (1/tau), matmul dtype
    yt_ref: [D, TN] or [D, B_pad]  normalized y, pre-transposed (MXU RHS layout)
    out_ref: [TB, 1]               per-row loss, written on the last column chunk
    m/l/d_sc: [TB, 1] f32          running max / sum-exp / positive-pair logit
    """
    i = pl.program_id(0)
    j = pl.program_id(1)

    @pl.when(j == 0)
    def _init():
        m_sc[...] = jnp.full_like(m_sc, -jnp.inf)
        l_sc[...] = jnp.zeros_like(l_sc)
        d_sc[...] = jnp.zeros_like(d_sc)

    x = x_ref[...]                                               # [TB, D]
    if yt_ref.shape[1] == tn:                                    # y tiled in HBM
        yt = yt_ref[...]                                         # [D, TN]
    else:                                                        # y VMEM-resident
        yt = yt_ref[:, pl.ds(pl.multiple_of(j * tn, tn), tn)]    # [D, TN] chunk

    # Logits chunk on the MXU; operands stay in matmul dtype, accumulate in f32.
    s = jnp.dot(x, yt, preferred_element_type=jnp.float32)       # [TB, TN]

    if padded:
        # Padded columns only appear after all real columns, and chunk j=0 always
        # contains real column 0, so by the time a fully-masked chunk can occur
        # m_sc is already finite and exp(-1e30 - m) underflows to exactly 0.
        col = j * tn + lax.broadcasted_iota(jnp.int32, s.shape, 1)
        s = jnp.where(col < n_valid, s, _NEG_BIG)

    # Positive-pair (diagonal) logit, extracted from the same logits used for the
    # LSE (keeps bf16 numerics consistent).  Only chunks intersecting the
    # diagonal of this row tile pay the O(TB*TN) mask + row reduce.
    @pl.when(jnp.logical_and(j * tn < (i + 1) * tb, i * tb < (j + 1) * tn))
    def _diag():
        row = i * tb + lax.broadcasted_iota(jnp.int32, s.shape, 0)
        col = j * tn + lax.broadcasted_iota(jnp.int32, s.shape, 1)
        d_sc[...] += jnp.sum(jnp.where(row == col, s, 0.0), axis=-1, keepdims=True)

    # Online log-sum-exp update (f32 throughout; v5e has no bf16 VPU/EUP).
    m_prev = m_sc[...]
    m_new = jnp.maximum(m_prev, jnp.max(s, axis=-1, keepdims=True))
    l_sc[...] = (jnp.exp(m_prev - m_new) * l_sc[...]
                 + jnp.sum(jnp.exp(s - m_new), axis=-1, keepdims=True))
    m_sc[...] = m_new

    @pl.when(j == pl.num_programs(1) - 1)
    def _finalize():
        # per-row CE loss = logsumexp(row) - positive-pair logit
        # TODO(synk): a lane-dense (1, TB) output would avoid the masked vst of a
        # [TB, 1] block, but needs a sublane->lane relayout for a tiny output.
        out_ref[...] = m_sc[...] + jnp.log(l_sc[...]) - d_sc[...]


@functools.partial(jax.jit, static_argnames=("tau", "sem_func", "matmul_dtype"))
def contrastive_loss(x, y, *, tau, sem_func, matmul_dtype=jnp.bfloat16):
    """Scalar InfoNCE loss matching the PyTorch ContrastiveLoss module.

    MXU operands default to bf16 (inputs are normalized / 1/tau-scaled once in
    f32, then cast). Pass matmul_dtype=jnp.float32 for exact-f32 logits.
    """
    B, D = x.shape
    assert y.shape == (B, D)

    # ---- one-time f32 preprocessing, hoisted out of the kernel --------------
    xf = x.astype(jnp.float32)
    yf = y.astype(jnp.float32)
    if sem_func == "cos":
        # F.normalize(v, dim=-1, eps=1e-12) == v * rsqrt(max(sum(v*v), eps^2))
        xf = xf * lax.rsqrt(jnp.maximum(jnp.sum(xf * xf, axis=-1, keepdims=True), 1e-24))
        yf = yf * lax.rsqrt(jnp.maximum(jnp.sum(yf * yf, axis=-1, keepdims=True), 1e-24))
    xf = xf * (1.0 / tau)               # fold 1/tau into x: O(B*D), not O(B*B)

    elt = jnp.dtype(matmul_dtype).itemsize
    TB, TN, B_pad, y_resident = _pick_tiling(B, D, elt)

    xp = xf.astype(matmul_dtype)
    yp = yf.astype(matmul_dtype)
    if B_pad != B:
        # The pad fuses with the normalize/cast copies above under jit, so it
        # does not add an extra full HBM pass.
        xp = jnp.pad(xp, ((0, B_pad - B), (0, 0)))
        yp = jnp.pad(yp, ((0, B_pad - B), (0, 0)))
    ytp = yp.T                           # [D, B_pad]: native MXU RHS layout

    grid = (B_pad // TB, B_pad // TN)    # (row tiles: parallel, chunks: reduction)

    kernel = functools.partial(_contrastive_kernel, tb=TB, tn=TN,
                               n_valid=B, padded=(B_pad != B))

    if y_resident:
        # Constant index_map: full y^T block is DMA'd once and stays in VMEM.
        y_spec = pl.BlockSpec((D, B_pad), lambda i, j: (0, 0))
    else:
        y_spec = pl.BlockSpec((D, TN), lambda i, j: (0, j))

    per_row = pl.pallas_call(
        kernel,
        out_shape=jax.ShapeDtypeStruct((B_pad, 1), jnp.float32),
        grid_spec=pltpu.PrefetchScalarGridSpec(
            num_scalar_prefetch=0,
            grid=grid,
            in_specs=[
                pl.BlockSpec((TB, D), lambda i, j: (i, 0)),   # x rows, resident over j
                y_spec,
            ],
            out_specs=pl.BlockSpec((TB, 1), lambda i, j: (i, 0)),
            scratch_shapes=[pltpu.VMEM((TB, 1), jnp.float32)] * 3,   # m, l, diag
        ),
        compiler_params=pltpu.CompilerParams(
            dimension_semantics=("parallel", "arbitrary"),
            vmem_limit_bytes=_VMEM_LIMIT),
    )(xp, ytp)

    # Tiny final reduction (mean over the B real rows) in plain JAX.
    return jnp.sum(per_row[:B, 0]) / B


def contrastive_loss_ref(x, y, *, tau, sem_func):
    """Pure-JAX f32 reference mirroring the PyTorch module."""
    x = x.astype(jnp.float32)
    y = y.astype(jnp.float32)
    if sem_func == "cos":
        x = x / jnp.maximum(jnp.linalg.norm(x, axis=-1, keepdims=True), 1e-12)
        y = y / jnp.maximum(jnp.linalg.norm(y, axis=-1, keepdims=True), 1e-12)
    logits = (x @ y.T) / tau
    B = x.shape[0]
    logprobs = jax.nn.log_softmax(logits, axis=-1)
    return -jnp.mean(logprobs[jnp.arange(B), jnp.arange(B)])


if __name__ == "__main__":
    tau = 0.07

    key = jax.random.PRNGKey(0)
    kx, ky = jax.random.split(key)

    # Small shapes consistent with the module: batch=8, hidden=32.
    B, D = 8, 32
    x = jax.random.normal(kx, (B, D), dtype=jnp.float32)
    y = jax.random.normal(ky, (B, D), dtype=jnp.float32)

    ref = contrastive_loss_ref(x, y, tau=tau, sem_func="cos")

    # Default bf16-MXU path: matches the f32 module up to bf16 logit rounding.
    out_bf16 = jax.block_until_ready(contrastive_loss(x, y, tau=tau, sem_func="cos"))
    assert jnp.allclose(out_bf16, ref, rtol=5e-2, atol=5e-2), (out_bf16, ref)

    # f32-MXU path: tight match to the reference.
    out_f32 = jax.block_until_ready(
        contrastive_loss(x, y, tau=tau, sem_func="cos", matmul_dtype=jnp.float32))
    assert jnp.allclose(out_f32, ref, rtol=1e-4, atol=1e-4), (out_f32, ref)

    # sem_func != 'cos' (no normalization).
    ref_dot = contrastive_loss_ref(x, y, tau=1.0, sem_func="dot")
    out_dot = jax.block_until_ready(
        contrastive_loss(x, y, tau=1.0, sem_func="dot", matmul_dtype=jnp.float32))
    assert jnp.allclose(out_dot, ref_dot, rtol=1e-4, atol=1e-4), (out_dot, ref_dot)

    # Padded batch exercising multiple row tiles, multiple column chunks, the
    # padded-column mask and the diagonal-chunk guard
    # (B=300 -> B_pad=512, TB=256, TN=256, y VMEM-resident).
    B2, D2 = 300, 64
    x2 = jax.random.normal(jax.random.PRNGKey(1), (B2, D2), dtype=jnp.float32)
    y2 = jax.random.normal(jax.random.PRNGKey(2), (B2, D2), dtype=jnp.float32)
    ref2 = contrastive_loss_ref(x2, y2, tau=tau, sem_func="cos")
    out2 = jax.block_until_ready(
        contrastive_loss(x2, y2, tau=tau, sem_func="cos", matmul_dtype=jnp.float32))
    assert jnp.allclose(out2, ref2, rtol=1e-4, atol=1e-4), (out2, ref2)

    print("KERNEL_OK")
</pallas_src>

<mosaic_0001>
module attributes {stable_mosaic.version = 11 : i64} {
  func.func @_contrastive_kernel(%arg0: i32, %arg1: i32, %arg2: memref<8x32xbf16, #tpu.memory_space<vmem>>, %arg3: memref<32x8xbf16, #tpu.memory_space<vmem>>, %arg4: memref<8x1xf32, #tpu.memory_space<vmem>>, %arg5: memref<8x1xf32, #tpu.memory_space<vmem>>, %arg6: memref<8x1xf32, #tpu.memory_space<vmem>>, %arg7: memref<8x1xf32, #tpu.memory_space<vmem>>) attributes {dimension_semantics = [#tpu.dimension_semantics<parallel>, #tpu.dimension_semantics<arbitrary>], iteration_bounds = array<i64: 1, 1>, scalar_prefetch = 0 : i64, scratch_operands = 3 : i64, tpu.core_type = #tpu.core_type<tc>, window_params = [{transform_indices = @transform_0, window_bounds = array<i64: 8, 32>}, {pipeline_mode = #tpu.pipeline_mode<synchronous>, transform_indices = @transform_1, window_bounds = array<i64: 32, 8>}, {transform_indices = @transform_2, window_bounds = array<i64: 8, 1>}]} {
    %c0_i32 = arith.constant 0 : i32
    %0 = arith.cmpi eq, %arg1, %c0_i32 : i32
    %1 = arith.extui %0 : i1 to i32
    %c0_i32_0 = arith.constant 0 : i32
    %2 = arith.cmpi ne, %1, %c0_i32_0 : i32
    scf.if %2 {
      %cst_21 = arith.constant 0xFF800000 : f32
      %36 = vector.broadcast %cst_21 : f32 to vector<8x1xf32>
      %c0_22 = arith.constant 0 : index
      %c0_23 = arith.constant 0 : index
      %37 = vector.load %arg5[%c0_22, %c0_23] : memref<8x1xf32, #tpu.memory_space<vmem>>, vector<8x1xf32>
      tpu.vector_store %arg5[%c0_22, %c0_23], %36 {strides = array<i32>} : memref<8x1xf32, #tpu.memory_space<vmem>>, vector<8x1xf32>,
      %cst_24 = arith.constant 0.000000e+00 : f32
      %38 = vector.broadcast %cst_24 : f32 to vector<8x1xf32>
      %c0_25 = arith.constant 0 : index
      %c0_26 = arith.constant 0 : index
      %39 = vector.load %arg6[%c0_25, %c0_26] : memref<8x1xf32, #tpu.memory_space<vmem>>, vector<8x1xf32>
      tpu.vector_store %arg6[%c0_25, %c0_26], %38 {strides = array<i32>} : memref<8x1xf32, #tpu.memory_space<vmem>>, vector<8x1xf32>,
      %cst_27 = arith.constant 0.000000e+00 : f32
      %40 = vector.broadcast %cst_27 : f32 to vector<8x1xf32>
      %c0_28 = arith.constant 0 : index
      %c0_29 = arith.constant 0 : index
      %41 = vector.load %arg7[%c0_28, %c0_29] : memref<8x1xf32, #tpu.memory_space<vmem>>, vector<8x1xf32>
      tpu.vector_store %arg7[%c0_28, %c0_29], %40 {strides = array<i32>} : memref<8x1xf32, #tpu.memory_space<vmem>>, vector<8x1xf32>,
    } else {
    }
    %c0 = arith.constant 0 : index
    %c0_1 = arith.constant 0 : index
    %3 = vector.load %arg2[%c0, %c0_1] : memref<8x32xbf16, #tpu.memory_space<vmem>>, vector<8x32xbf16>
    %c0_2 = arith.constant 0 : index
    %c0_3 = arith.constant 0 : index
    %4 = vector.load %arg3[%c0_2, %c0_3] : memref<32x8xbf16, #tpu.memory_space<vmem>>, vector<32x8xbf16>
    %cst = arith.constant dense<0.000000e+00> : vector<8x8xf32>
    %5 = tpu.matmul %3, %4, %cst {dimension_numbers = #tpu.dot_dimension_numbers<[1], [0], [0], [1], [0, 0, 1, 1], [], []>} : vector<8x32xbf16>, vector<32x8xbf16>, vector<8x8xf32> -> vector<8x8xf32>
    %c8_i32 = arith.constant 8 : i32
    %6 = arith.muli %arg1, %c8_i32 : i32
    %c1_i32 = arith.constant 1 : i32
    %7 = arith.addi %arg0, %c1_i32 : i32
    %c8_i32_4 = arith.constant 8 : i32
    %8 = arith.muli %7, %c8_i32_4 : i32
    %9 = arith.cmpi slt, %6, %8 : i32
    %c8_i32_5 = arith.constant 8 : i32
    %10 = arith.muli %arg0, %c8_i32_5 : i32
    %c1_i32_6 = arith.constant 1 : i32
    %11 = arith.addi %arg1, %c1_i32_6 : i32
    %c8_i32_7 = arith.constant 8 : i32
    %12 = arith.muli %11, %c8_i32_7 : i32
    %13 = arith.cmpi slt, %10, %12 : i32
    %14 = arith.andi %9, %13 : i1
    %15 = arith.extui %14 : i1 to i32
    %c0_i32_8 = arith.constant 0 : i32
    %16 = arith.cmpi ne, %15, %c0_i32_8 : i32
    scf.if %16 {
      %c8_i32_21 = arith.constant 8 : i32
      %36 = arith.muli %arg0, %c8_i32_21 : i32
      %37 = tpu.iota {dimensions = array<i32: 0>} : vector<8x8xi32>
      %38 = vector.broadcast %36 : i32 to vector<8x8xi32>
      %39 = arith.addi %38, %37 : vector<8x8xi32>
      %c8_i32_22 = arith.constant 8 : i32
      %40 = arith.muli %arg1, %c8_i32_22 : i32
      %41 = tpu.iota {dimensions = array<i32: 1>} : vector<8x8xi32>
      %42 = vector.broadcast %40 : i32 to vector<8x8xi32>
      %43 = arith.addi %42, %41 : vector<8x8xi32>
      %c0_23 = arith.constant 0 : index
      %c0_24 = arith.constant 0 : index
      %44 = vector.load %arg7[%c0_23, %c0_24] : memref<8x1xf32, #tpu.memory_space<vmem>>, vector<8x1xf32>
      %45 = arith.cmpi eq, %39, %43 : vector<8x8xi32>
      %cst_25 = arith.constant 0.000000e+00 : f32
      %46 = vector.broadcast %cst_25 : f32 to vector<8x8xf32>
      %47 = arith.select %45, %5, %46 : vector<8x8xi1>, vector<8x8xf32>
      %cst_26 = arith.constant dense<0.000000e+00> : vector<8xf32>
      %48 = vector.multi_reduction <add>, %47, %cst_26 [1] : vector<8x8xf32> to vector<8xf32>
      %49 = vector.shape_cast %48 : vector<8xf32> to vector<8x1xf32>
      %50 = arith.addf %44, %49 : vector<8x1xf32>
      %c0_27 = arith.constant 0 : index
      %c0_28 = arith.constant 0 : index
      %51 = vector.load %arg7[%c0_27, %c0_28] : memref<8x1xf32, #tpu.memory_space<vmem>>, vector<8x1xf32>
      tpu.vector_store %arg7[%c0_27, %c0_28], %50 {strides = array<i32>} : memref<8x1xf32, #tpu.memory_space<vmem>>, vector<8x1xf32>,
    } else {
    }
    %c0_9 = arith.constant 0 : index
    %c0_10 = arith.constant 0 : index
    %17 = vector.load %arg5[%c0_9, %c0_10] : memref<8x1xf32, #tpu.memory_space<vmem>>, vector<8x1xf32>
    %cst_11 = arith.constant dense<0xFF800000> : vector<8xf32>
    %18 = vector.multi_reduction <maximumf>, %5, %cst_11 [1] : vector<8x8xf32> to vector<8xf32>
    %19 = vector.shape_cast %18 : vector<8xf32> to vector<8x1xf32>
    %20 = arith.maximumf %17, %19 : vector<8x1xf32>
    %21 = arith.subf %17, %20 : vector<8x1xf32>
    %22 = math.exp %21 : vector<8x1xf32>
    %c0_12 = arith.constant 0 : index
    %c0_13 = arith.constant 0 : index
    %23 = vector.load %arg6[%c0_12, %c0_13] : memref<8x1xf32, #tpu.memory_space<vmem>>, vector<8x1xf32>
    %24 = arith.mulf %22, %23 : vector<8x1xf32>
    %25 = vector.broadcast %20 : vector<8x1xf32> to vector<8x8xf32>
    %26 = arith.subf %5, %25 : vector<8x8xf32>
    %27 = math.exp %26 : vector<8x8xf32>
    %cst_14 = arith.constant dense<0.000000e+00> : vector<8xf32>
    %28 = vector.multi_reduction <add>, %27, %cst_14 [1] : vector<8x8xf32> to vector<8xf32>
    %29 = vector.shape_cast %28 : vector<8xf32> to vector<8x1xf32>
    %30 = arith.addf %24, %29 : vector<8x1xf32>
    %c0_15 = arith.constant 0 : index
    %c0_16 = arith.constant 0 : index
    %31 = vector.load %arg6[%c0_15, %c0_16] : memref<8x1xf32, #tpu.memory_space<vmem>>, vector<8x1xf32>
    tpu.vector_store %arg6[%c0_15, %c0_16], %30 {strides = array<i32>} : memref<8x1xf32, #tpu.memory_space<vmem>>, vector<8x1xf32>,
    %c0_17 = arith.constant 0 : index
    %c0_18 = arith.constant 0 : index
    %32 = vector.load %arg5[%c0_17, %c0_18] : memref<8x1xf32, #tpu.memory_space<vmem>>, vector<8x1xf32>
    tpu.vector_store %arg5[%c0_17, %c0_18], %20 {strides = array<i32>} : memref<8x1xf32, #tpu.memory_space<vmem>>, vector<8x1xf32>,
    %c0_i32_19 = arith.constant 0 : i32
    %33 = arith.cmpi eq, %arg1, %c0_i32_19 : i32
    %34 = arith.extui %33 : i1 to i32
    %c0_i32_20 = arith.constant 0 : i32
    %35 = arith.cmpi ne, %34, %c0_i32_20 : i32
    scf.if %35 {
      %c0_21 = arith.constant 0 : index
      %c0_22 = arith.constant 0 : index
      %36 = vector.load %arg5[%c0_21, %c0_22] : memref<8x1xf32, #tpu.memory_space<vmem>>, vector<8x1xf32>
      %c0_23 = arith.constant 0 : index
      %c0_24 = arith.constant 0 : index
      %37 = vector.load %arg6[%c0_23, %c0_24] : memref<8x1xf32, #tpu.memory_space<vmem>>, vector<8x1xf32>
      %38 = math.log %37 : vector<8x1xf32>
      %39 = arith.addf %36, %38 : vector<8x1xf32>
      %c0_25 = arith.constant 0 : index
      %c0_26 = arith.constant 0 : index
      %40 = vector.load %arg7[%c0_25, %c0_26] : memref<8x1xf32, #tpu.memory_space<vmem>>, vector<8x1xf32>
      %41 = arith.subf %39, %40 : vector<8x1xf32>
      %c0_27 = arith.constant 0 : index
      %c0_28 = arith.constant 0 : index
      %42 = vector.load %arg4[%c0_27, %c0_28] : memref<8x1xf32, #tpu.memory_space<vmem>>, vector<8x1xf32>
      tpu.vector_store %arg4[%c0_27, %c0_28], %41 {strides = array<i32>} : memref<8x1xf32, #tpu.memory_space<vmem>>, vector<8x1xf32>,
    } else {
    }
    return
  }
  func.func @transform_0(%arg0: i32, %arg1: i32) -> (i32, i32) {
    %c0_i32 = arith.constant 0 : i32
    %c0_i32_0 = arith.constant 0 : i32
    return %arg0, %c0_i32 : i32, i32
  }
  func.func @transform_1(%arg0: i32, %arg1: i32) -> (i32, i32) {
    %c0_i32 = arith.constant 0 : i32
    %c0_i32_0 = arith.constant 0 : i32
    %c0_i32_1 = arith.constant 0 : i32
    return %c0_i32, %c0_i32_0 : i32, i32
  }
  func.func @transform_2(%arg0: i32, %arg1: i32) -> (i32, i32) {
    %c0_i32 = arith.constant 0 : i32
    %c0_i32_0 = arith.constant 0 : i32
    return %arg0, %c0_i32 : i32, i32
  }
}

</mosaic_0001>

<bundles_post_ra>
// kernel: contrastive_loss.1
= control target key start
LH: loop header
LB: loop body
LE: loop exit
PB: predicated region body
PF: predicated region fallthrough
CT: control target
= control target key end

     0   :  { %vm37_vm0 = vcmask 261120   ;;  %vm16_vm1 = vcmask 7168   ;;  %v146_v3 = vmov -inf   ;;  %vm77_vm2 = vcmask 64512   ;;  %s186_s1 = inlined_call_operand.vmem [shape: bf16[32,8], index: 1, kind: input, shape index: {}]   ;;  %s187_s0 = inlined_call_operand.vmem [shape: bf16[8,32], index: 0, kind: input, shape index: {}]   ;;  %s188_s2 = inlined_call_operand.vmem [shape: f32[8,1], index: 2, kind: output, shape index: {}]  }
   0x1   :  { %v135_v0 = vld [vmem:[%s186_s1 + $0x8] sm:$0xff]  ;;  %v134_v1 = vld [vmem:[%s186_s1] sm:$0xff]  ;;  %17 = vst.msk [vmem:[#allocation2] sm:$0xff] %vm16_vm1, %v146_v3  ;;  %v147_v7 = vmov 0   ;;  %v148_v8 = vmov 0.0   ;;  %v66_v16 = vlaneseq }
   0x2   :  { %47 = vmatpush.bf16.msra.mxu0 %v135_v0  ;;  %v20_v2 = vld [vmem:[%s187_s0] sm:$0xf]  ;;  %139 = vset.pattern.permute.xlu0 %v147_v7  ;;  %18 = vst.msk [vmem:[#allocation3] sm:$0xff] %vm16_vm1, %v148_v8 }
   0x3   :  { %19 = vst.msk [vmem:[#allocation4] sm:$0xff] %vm16_vm1, %v148_v8  ;;  %v67_v17 = vshrl.u32 %v66_v16, 7  ;;  %v71_v18 = vand.u32 127, %v66_v16 }
   0x5   :  { %vm75_vm3 = vcmp.eq.s32.totalorder %v67_v17, %v71_v18 }
   0x6   :  { %48 = vmatpush.bf16.msra.mxu0 %v134_v1 }
   0x8   :  { %v84_v9 = vld [vmem:[#allocation2] sm:$0xff] }
   0x9   :  { %133 = vmatmul.msk.bf16.vlgmr.msra.gmra.mxu0 %vm37_vm0, %v20_v2  ;;  %v93_v25 = vld [vmem:[#allocation3] sm:$0xff] }
   0xa   :  { %v74_v29 = vld [vmem:[#allocation4] sm:$0xff] }
  0x86   :  { %v50_v4 = vpop.f32.mrf.mxu0 }
  0x87   :  { %v86_v5 = vsel %vm77_vm2, %v50_v4, -inf  ;;  %v76_v21 = vsel %vm75_vm3, %v50_v4, 0.0 }
  0x88   :  { %87 = vmax.xlane.f32.xlu0 %v86_v5  ;;  %v78_v22 = vsel %vm77_vm2, %v76_v21, 0.0 }
  0x8e   :  { %v52_v6 = vpop.f32.mrf.mxu0 }
  0xfb   :  { %v88_v10 = vpop.xlane.xlu0 %87 }
  0xfc   :  { %v89_v11 = vmax.f32 %v84_v9, %v88_v10 }
  0xfe   :  { %v90_v12 = vsub.f32 %v84_v9, %v89_v11  ;;  %109 = vst.msk [vmem:[#allocation2] sm:$0xff] %vm16_vm1, %v89_v11  ;;  %97 = vperm.xlu0 %139, %v89_v11  }
 0x100   :  { %v91_v23 = vmul.f32 1.442695, %v90_v12 }
 0x105   :  { %v113_v35 = vld [vmem:[#allocation2] sm:$0xff] }
 0x170   :  { %v98_v13 = vpop.permute.xlu0 %97 }
 0x171   :  { %v100_v14 = vsub.f32 %v50_v4, %v98_v13 }
 0x173   :  { %v101_v15 = vmul.f32 1.442695, %v100_v14 }
 0x175   :  { %140 = vpow2.f32 %v101_v15 }
 0x176   :  { %142 = vpow2.f32 %v91_v23 }
 0x17b   :  { %v141_v19 = vpop.eup %140 }
 0x17c   :  { %v103_v20 = vsel %vm77_vm2, %v141_v19, 0.0  ;;  %v143_v24 = vpop.eup %142 }
 0x17d   :  { %104 = vadd.xlane.f32.xlu1 %v103_v20  ;;  %v94_v26 = vmul.f32 %v143_v24, %v93_v25 }
 0x185   :  { %79 = vadd.xlane.f32.xlu1 %v78_v22 }
 0x1f0   :  { %v105_v27 = vpop.xlane.xlu1 %104 }
 0x1f1   :  { %v106_v28 = vadd.f32 %v105_v27, %v94_v26 }
 0x1f3   :  { %108 = vst.msk [vmem:[#allocation3] sm:$0xff] %vm16_vm1, %v106_v28 }
 0x1f8   :  { %v80_v30 = vpop.xlane.xlu1 %79 }
 0x1f9   :  { %v81_v31 = vadd.f32 %v80_v30, %v74_v29 }
 0x1fa   :  { %v114_v32 = vld [vmem:[#allocation3] sm:$0xff] }
 0x1fb   :  { %144 = vlog2.f32 %v114_v32  ;;  %83 = vst.msk [vmem:[#allocation4] sm:$0xff] %vm16_vm1, %v81_v31 }
 0x201   :  { %v145_v33 = vpop.eup %144 }
 0x202   :  { %v116_v34 = vmul.f32 0.6931472, %v145_v33  ;;  %v118_v37 = vld [vmem:[#allocation4] sm:$0xff] }
 0x204   :  { %v117_v36 = vadd.f32 %v116_v34, %v113_v35 }
 0x206   :  { %v119_v38 = vsub.f32 %v117_v36, %v118_v37 }
 0x208   :  { %120 = vst.msk [vmem:[%s188_s2] sm:$0xff] %vm16_vm1, %v119_v38 }

</bundles_post_ra>
